<compile_context>
chip_gen: v7x
topology: tpu7x:2x2x1
jax: 0.10.0
libtpu: 0.0.40
codegen_flags: <defaults>
</compile_context>

<pallas_src>
import jax
import jax.numpy as jnp
from jax.experimental import pallas as pl
from jax.experimental.pallas import tpu as pltpu

_LANES = 1024       # wide lane-dense last dim (multiple of 128)
_TILE_ROWS = 256    # 256 x 1024 f32 block = 1 MiB; 12 live buffers ~ 10.5 MiB VMEM


def _elementwise_kernel(x_ref, add_ref, sub_ref, mul_ref, div_ref, cmp_ref):
    x = x_ref[...]
    add_ref[...] = x + 5.0
    sub_ref[...] = x - 3.0
    mul_ref[...] = x * 2.0
    div_ref[...] = x * 0.25          # x / 4 (power-of-two divisor -> bit-exact)
    cmp_ref[...] = (x > 0.0).astype(jnp.int8)


def pt_module_forward(x):
    """x: float32 array of shape [N, C, H, W] (NCHW)."""
    orig_shape = x.shape
    total = x.size

    rows = pl.cdiv(total, _LANES)
    rows_padded = -(-rows // 8) * 8            # round up to sublane multiple
    padded_total = rows_padded * _LANES

    x_flat = jnp.reshape(x, (-1,))
    if padded_total != total:
        # Minimal tail pad only (< 8 * _LANES elements); skipped when even.
        x_flat = jnp.pad(x_flat, (0, padded_total - total))
    x2d = jnp.reshape(x_flat, (rows_padded, _LANES))

    tile_rows = min(_TILE_ROWS, rows_padded)   # still a multiple of 8
    grid = (pl.cdiv(rows_padded, tile_rows),)

    spec = pl.BlockSpec((tile_rows, _LANES), lambda i: (i, 0))
    f32_out = jax.ShapeDtypeStruct((rows_padded, _LANES), jnp.float32)
    i8_out = jax.ShapeDtypeStruct((rows_padded, _LANES), jnp.int8)

    add2d, sub2d, mul2d, div2d, cmp2d = pl.pallas_call(
        _elementwise_kernel,
        out_shape=(f32_out, f32_out, f32_out, f32_out, i8_out),
        grid_spec=pltpu.PrefetchScalarGridSpec(
            num_scalar_prefetch=0,
            grid=grid,
            in_specs=[spec],
            out_specs=[spec] * 5,
        ),
        compiler_params=pltpu.CompilerParams(
            dimension_semantics=("parallel",),   # shard grid across TCs on v7x
        ),
    )(x2d)

    def _unflatten(y, dtype):
        y = jnp.reshape(y, (-1,))
        if padded_total != total:
            y = y[:total]
        y = jnp.reshape(y, orig_shape)
        return y if y.dtype == dtype else y.astype(dtype)

    return {
        "addition": _unflatten(add2d, jnp.float32),
        "subtraction": _unflatten(sub2d, jnp.float32),
        "multiplication": _unflatten(mul2d, jnp.float32),
        "division": _unflatten(div2d, jnp.float32),
        "comparison": _unflatten(cmp2d, jnp.bool_),
    }


if __name__ == "__main__":
    key = jax.random.PRNGKey(0)
    x = jax.random.normal(key, (2, 4, 16, 16), dtype=jnp.float32)

    out = jax.jit(pt_module_forward)(x)
    jax.block_until_ready(out)

    # Sanity check against plain-JAX reference.
    assert jnp.allclose(out["addition"], x + 5)
    assert jnp.allclose(out["subtraction"], x - 3)
    assert jnp.allclose(out["multiplication"], x * 2)
    assert jnp.allclose(out["division"], x / 4)
    assert jnp.array_equal(out["comparison"], x > 0)
    assert out["comparison"].dtype == jnp.bool_

    print("KERNEL_OK")
</pallas_src>

<mosaic_0001>
module attributes {stable_mosaic.version = 11 : i64} {
  func.func @_elementwise_kernel(%arg0: i32, %arg1: memref<8x1024xf32, #tpu.memory_space<vmem>>, %arg2: memref<8x1024xf32, #tpu.memory_space<vmem>>, %arg3: memref<8x1024xf32, #tpu.memory_space<vmem>>, %arg4: memref<8x1024xf32, #tpu.memory_space<vmem>>, %arg5: memref<8x1024xf32, #tpu.memory_space<vmem>>, %arg6: memref<8x1024xi8, #tpu.memory_space<vmem>>) attributes {dimension_semantics = [#tpu.dimension_semantics<parallel>], iteration_bounds = array<i64: 1>, scalar_prefetch = 0 : i64, scratch_operands = 0 : i64, tpu.core_type = #tpu.core_type<tc>, window_params = [{transform_indices = @transform_0, window_bounds = array<i64: 8, 1024>}, {transform_indices = @transform_1, window_bounds = array<i64: 8, 1024>}, {transform_indices = @transform_2, window_bounds = array<i64: 8, 1024>}, {transform_indices = @transform_3, window_bounds = array<i64: 8, 1024>}, {transform_indices = @transform_4, window_bounds = array<i64: 8, 1024>}, {transform_indices = @transform_5, window_bounds = array<i64: 8, 1024>}]} {
    %c0 = arith.constant 0 : index
    %c0_0 = arith.constant 0 : index
    %0 = vector.load %arg1[%c0, %c0_0] : memref<8x1024xf32, #tpu.memory_space<vmem>>, vector<8x1024xf32>
    %cst = arith.constant 5.000000e+00 : f32
    %1 = vector.broadcast %cst : f32 to vector<8x1024xf32>
    %2 = arith.addf %0, %1 : vector<8x1024xf32>
    %c0_1 = arith.constant 0 : index
    %c0_2 = arith.constant 0 : index
    %3 = vector.load %arg2[%c0_1, %c0_2] : memref<8x1024xf32, #tpu.memory_space<vmem>>, vector<8x1024xf32>
    tpu.vector_store %arg2[%c0_1, %c0_2], %2 {strides = array<i32>} : memref<8x1024xf32, #tpu.memory_space<vmem>>, vector<8x1024xf32>,
    %cst_3 = arith.constant 3.000000e+00 : f32
    %4 = vector.broadcast %cst_3 : f32 to vector<8x1024xf32>
    %5 = arith.subf %0, %4 : vector<8x1024xf32>
    %c0_4 = arith.constant 0 : index
    %c0_5 = arith.constant 0 : index
    %6 = vector.load %arg3[%c0_4, %c0_5] : memref<8x1024xf32, #tpu.memory_space<vmem>>, vector<8x1024xf32>
    tpu.vector_store %arg3[%c0_4, %c0_5], %5 {strides = array<i32>} : memref<8x1024xf32, #tpu.memory_space<vmem>>, vector<8x1024xf32>,
    %cst_6 = arith.constant 2.000000e+00 : f32
    %7 = vector.broadcast %cst_6 : f32 to vector<8x1024xf32>
    %8 = arith.mulf %0, %7 : vector<8x1024xf32>
    %c0_7 = arith.constant 0 : index
    %c0_8 = arith.constant 0 : index
    %9 = vector.load %arg4[%c0_7, %c0_8] : memref<8x1024xf32, #tpu.memory_space<vmem>>, vector<8x1024xf32>
    tpu.vector_store %arg4[%c0_7, %c0_8], %8 {strides = array<i32>} : memref<8x1024xf32, #tpu.memory_space<vmem>>, vector<8x1024xf32>,
    %cst_9 = arith.constant 2.500000e-01 : f32
    %10 = vector.broadcast %cst_9 : f32 to vector<8x1024xf32>
    %11 = arith.mulf %0, %10 : vector<8x1024xf32>
    %c0_10 = arith.constant 0 : index
    %c0_11 = arith.constant 0 : index
    %12 = vector.load %arg5[%c0_10, %c0_11] : memref<8x1024xf32, #tpu.memory_space<vmem>>, vector<8x1024xf32>
    tpu.vector_store %arg5[%c0_10, %c0_11], %11 {strides = array<i32>} : memref<8x1024xf32, #tpu.memory_space<vmem>>, vector<8x1024xf32>,
    %cst_12 = arith.constant 0.000000e+00 : f32
    %13 = vector.broadcast %cst_12 : f32 to vector<8x1024xf32>
    %14 = arith.cmpf ogt, %0, %13 : vector<8x1024xf32>
    %15 = arith.extui %14 : vector<8x1024xi1> to vector<8x1024xi8>
    %c0_13 = arith.constant 0 : index
    %c0_14 = arith.constant 0 : index
    %16 = vector.load %arg6[%c0_13, %c0_14] : memref<8x1024xi8, #tpu.memory_space<vmem>>, vector<8x1024xi8>
    tpu.vector_store %arg6[%c0_13, %c0_14], %15 {strides = array<i32>} : memref<8x1024xi8, #tpu.memory_space<vmem>>, vector<8x1024xi8>,
    return
  }
  func.func @transform_0(%arg0: i32) -> (i32, i32) {
    %c0_i32 = arith.constant 0 : i32
    %c0_i32_0 = arith.constant 0 : i32
    return %arg0, %c0_i32 : i32, i32
  }
  func.func @transform_1(%arg0: i32) -> (i32, i32) {
    %c0_i32 = arith.constant 0 : i32
    %c0_i32_0 = arith.constant 0 : i32
    return %arg0, %c0_i32 : i32, i32
  }
  func.func @transform_2(%arg0: i32) -> (i32, i32) {
    %c0_i32 = arith.constant 0 : i32
    %c0_i32_0 = arith.constant 0 : i32
    return %arg0, %c0_i32 : i32, i32
  }
  func.func @transform_3(%arg0: i32) -> (i32, i32) {
    %c0_i32 = arith.constant 0 : i32
    %c0_i32_0 = arith.constant 0 : i32
    return %arg0, %c0_i32 : i32, i32
  }
  func.func @transform_4(%arg0: i32) -> (i32, i32) {
    %c0_i32 = arith.constant 0 : i32
    %c0_i32_0 = arith.constant 0 : i32
    return %arg0, %c0_i32 : i32, i32
  }
  func.func @transform_5(%arg0: i32) -> (i32, i32) {
    %c0_i32 = arith.constant 0 : i32
    %c0_i32_0 = arith.constant 0 : i32
    return %arg0, %c0_i32 : i32, i32
  }
}

</mosaic_0001>

<bundles_post_ra>
// kernel: pt_module_forward.1
= control target key start
LH: loop header
LB: loop body
LE: loop exit
PB: predicated region body
PF: predicated region fallthrough
CT: control target
= control target key end

     0   :  { %v164_v40 = vmov 0   ;;  %s377_s0 = inlined_call_operand.vmem [shape: f32[8,1024], index: 0, kind: input, shape index: {}]   ;;  %s378_s1 = inlined_call_operand.vmem [shape: f32[8,1024], index: 1, kind: output, shape index: {0}]   ;;  %s379_s2 = inlined_call_operand.vmem [shape: f32[8,1024], index: 2, kind: output, shape index: {1}]   ;;  %s380_s3 = inlined_call_operand.vmem [shape: f32[8,1024], index: 3, kind: output, shape index: {2}]   ;;  %s381_s4 = inlined_call_operand.vmem [shape: f32[8,1024], index: 4, kind: output, shape index: {3}]   ;;  %s382_s5 = inlined_call_operand.vmem [shape: s8[8,1024], index: 5, kind: output, shape index: {4}]  }
   0x1   :  { %v198_v0 = vld [vmem:[%s377_s0] sm:$0xff]  ;;  %v203_v1 = vld [vmem:[%s377_s0 + $0x8] sm:$0xff]  ;;  %v208_v2 = vld [vmem:[%s377_s0 + $0x10] sm:$0xff] }
   0x2   :  { %v23_v3 = vadd.f32 5.0, %v198_v0  ;;  %v24_v4 = vadd.f32 5.0, %v203_v1  ;;  %v25_v5 = vadd.f32 5.0, %v208_v2  ;;  %v216_v6 = vld [vmem:[%s377_s0 + $0x18] sm:$0xff]  ;;  %v221_v7 = vld [vmem:[%s377_s0 + $0x20] sm:$0xff]  ;;  %v226_v8 = vld [vmem:[%s377_s0 + $0x28] sm:$0xff] }
   0x3   :  { %v26_v9 = vadd.f32 5.0, %v216_v6  ;;  %v27_v10 = vadd.f32 5.0, %v221_v7  ;;  %v28_v11 = vadd.f32 5.0, %v226_v8  ;;  %v234_v12 = vld [vmem:[%s377_s0 + $0x30] sm:$0xff]  ;;  %v239_v13 = vld [vmem:[%s377_s0 + $0x38] sm:$0xff]  ;;  %v155_v14 = vadd.f32 -3.0, %v198_v0 }
   0x4   :  { %31 = vst [vmem:[%s378_s1] sm:$0xff] %v23_v3  ;;  %32 = vst [vmem:[%s378_s1 + $0x8] sm:$0xff] %v24_v4  ;;  %v29_v15 = vadd.f32 5.0, %v234_v12  ;;  %v30_v16 = vadd.f32 5.0, %v239_v13  ;;  %v156_v17 = vadd.f32 -3.0, %v203_v1  ;;  %v157_v18 = vadd.f32 -3.0, %v208_v2 }
   0x5   :  { %33 = vst [vmem:[%s378_s1 + $0x10] sm:$0xff] %v25_v5  ;;  %34 = vst [vmem:[%s378_s1 + $0x18] sm:$0xff] %v26_v9  ;;  %v158_v19 = vadd.f32 -3.0, %v216_v6  ;;  %v159_v20 = vadd.f32 -3.0, %v221_v7  ;;  %v160_v21 = vadd.f32 -3.0, %v226_v8  ;;  %v161_v22 = vadd.f32 -3.0, %v234_v12 }
   0x6   :  { %35 = vst [vmem:[%s378_s1 + $0x20] sm:$0xff] %v27_v10  ;;  %36 = vst [vmem:[%s378_s1 + $0x28] sm:$0xff] %v28_v11  ;;  %v162_v23 = vadd.f32 -3.0, %v239_v13  ;;  %v55_v24 = vmul.f32 2.0, %v198_v0  ;;  %v56_v25 = vmul.f32 2.0, %v203_v1  ;;  %v57_v26 = vmul.f32 2.0, %v208_v2 }
   0x7   :  { %47 = vst [vmem:[%s379_s2] sm:$0xff] %v155_v14  ;;  %37 = vst [vmem:[%s378_s1 + $0x30] sm:$0xff] %v29_v15  ;;  %v58_v27 = vmul.f32 2.0, %v216_v6  ;;  %v59_v28 = vmul.f32 2.0, %v221_v7  ;;  %v60_v29 = vmul.f32 2.0, %v226_v8  ;;  %v61_v30 = vmul.f32 2.0, %v234_v12 }
   0x8   :  { %38 = vst [vmem:[%s378_s1 + $0x38] sm:$0xff] %v30_v16  ;;  %48 = vst [vmem:[%s379_s2 + $0x8] sm:$0xff] %v156_v17  ;;  %v62_v31 = vmul.f32 2.0, %v239_v13  ;;  %v71_v32 = vmul.f32 0.25, %v198_v0  ;;  %v72_v33 = vmul.f32 0.25, %v203_v1  ;;  %v73_v34 = vmul.f32 0.25, %v208_v2 }
   0x9   :  { %49 = vst [vmem:[%s379_s2 + $0x10] sm:$0xff] %v157_v18  ;;  %50 = vst [vmem:[%s379_s2 + $0x18] sm:$0xff] %v158_v19  ;;  %v74_v35 = vmul.f32 0.25, %v216_v6  ;;  %v75_v36 = vmul.f32 0.25, %v221_v7  ;;  %v76_v37 = vmul.f32 0.25, %v226_v8  ;;  %v77_v38 = vmul.f32 0.25, %v234_v12 }
   0xa   :  { %51 = vst [vmem:[%s379_s2 + $0x20] sm:$0xff] %v159_v20  ;;  %52 = vst [vmem:[%s379_s2 + $0x28] sm:$0xff] %v160_v21  ;;  %v78_v39 = vmul.f32 0.25, %v239_v13  ;;  %vm87_vm0 = vcmp.gt.f32.partialorder %v198_v0, 0.0  ;;  %vm88_vm1 = vcmp.gt.f32.partialorder %v203_v1, 0.0  ;;  %vm89_vm3 = vcmp.gt.f32.partialorder %v208_v2, 0.0 }
   0xb   :  { %53 = vst [vmem:[%s379_s2 + $0x30] sm:$0xff] %v161_v22  ;;  %54 = vst [vmem:[%s379_s2 + $0x38] sm:$0xff] %v162_v23  ;;  %vm90_vm6 = vcmp.gt.f32.partialorder %v216_v6, 0.0  ;;  %vm91_vm10 = vcmp.gt.f32.partialorder %v221_v7, 0.0  ;;  %vm92_vm13 = vcmp.gt.f32.partialorder %v226_v8, 0.0  ;;  %vm93_vm15 = vcmp.gt.f32.partialorder %v234_v12, 0.0 }
   0xc   :  { %63 = vst [vmem:[%s380_s3] sm:$0xff] %v55_v24  ;;  %64 = vst [vmem:[%s380_s3 + $0x8] sm:$0xff] %v56_v25 }
   0xd   :  { %65 = vst [vmem:[%s380_s3 + $0x10] sm:$0xff] %v57_v26  ;;  %66 = vst [vmem:[%s380_s3 + $0x18] sm:$0xff] %v58_v27 }
   0xe   :  { %67 = vst [vmem:[%s380_s3 + $0x20] sm:$0xff] %v59_v28  ;;  %68 = vst [vmem:[%s380_s3 + $0x28] sm:$0xff] %v60_v29 }
   0xf   :  { %69 = vst [vmem:[%s380_s3 + $0x30] sm:$0xff] %v61_v30  ;;  %70 = vst [vmem:[%s380_s3 + $0x38] sm:$0xff] %v62_v31 }
  0x10   :  { %79 = vst [vmem:[%s381_s4] sm:$0xff] %v71_v32  ;;  %80 = vst [vmem:[%s381_s4 + $0x8] sm:$0xff] %v72_v33 }
  0x11   :  { %81 = vst [vmem:[%s381_s4 + $0x10] sm:$0xff] %v73_v34  ;;  %82 = vst [vmem:[%s381_s4 + $0x18] sm:$0xff] %v74_v35 }
  0x12   :  { %83 = vst [vmem:[%s381_s4 + $0x20] sm:$0xff] %v75_v36  ;;  %84 = vst [vmem:[%s381_s4 + $0x28] sm:$0xff] %v76_v37 }
  0x13   :  { %85 = vst [vmem:[%s381_s4 + $0x30] sm:$0xff] %v77_v38  ;;  %vm95_vm2 = vmpackc.low %vm87_vm0, %vm87_vm0 }
  0x14   :  { %86 = vst [vmem:[%s381_s4 + $0x38] sm:$0xff] %v78_v39  ;;  %vm96_vm4 = vmpackc.even %vm95_vm2, %vm95_vm2  ;;  %vm94_vm2 = vcmp.gt.f32.partialorder %v239_v13, 0.0 }
  0x15   :  { %vm97_vm5 = vmpackc.low %vm88_vm1, %vm88_vm1  ;;  %v111_v41 = vsel %vm96_vm4, 16843009, %v164_v40 }
  0x16   :  { %vm98_vm7 = vmpackc.even %vm97_vm5, %vm97_vm5  ;;  %v119_v43 = vunpack.c.0.s8 %v111_v41 }
  0x17   :  { %vm99_vm8 = vmpackc.low %vm89_vm3, %vm89_vm3  ;;  %v112_v42 = vsel %vm98_vm7, 16843009, %v164_v40 }
  0x18   :  { %vm100_vm9 = vmpackc.even %vm99_vm8, %vm99_vm8  ;;  %v120_v44 = vunpack.c.0.s8 %v112_v42 }
  0x19   :  { %vm101_vm11 = vmpackc.low %vm90_vm6, %vm90_vm6  ;;  %v113_v45 = vsel %vm100_vm9, 16843009, %v164_v40 }
  0x1a   :  { %vm102_vm12 = vmpackc.even %vm101_vm11, %vm101_vm11  ;;  %v121_v46 = vunpack.c.0.s8 %v113_v45  ;;  %v127_v49 = vpack.c.b16 %v120_v44, %v119_v43 }
  0x1b   :  { %v114_v47 = vsel %vm102_vm12, 16843009, %v164_v40  ;;  %vm103_vm14 = vmpackc.low %vm91_vm10, %vm91_vm10 }
  0x1c   :  { %v122_v48 = vunpack.c.0.s8 %v114_v47  ;;  %vm104_vm0 = vmpackc.even %vm103_vm14, %vm103_vm14 }
  0x1d   :  { %vm105_vm1 = vmpackc.low %vm92_vm13, %vm92_vm13  ;;  %v115_v50 = vsel %vm104_vm0, 16843009, %v164_v40 }
  0x1e   :  { %v128_v51 = vpack.c.b16 %v122_v48, %v121_v46  ;;  %vm106_vm3 = vmpackc.even %vm105_vm1, %vm105_vm1  ;;  %v123_v54 = vunpack.c.0.s8 %v115_v50 }
  0x1f   :  { %vm107_vm4 = vmpackc.low %vm93_vm15, %vm93_vm15  ;;  %v116_v52 = vsel %vm106_vm3, 16843009, %v164_v40 }
  0x20   :  { %v129_v53 = vpack.c.b8 %v128_v51, %v127_v49  ;;  %vm108_vm5 = vmpackc.even %vm107_vm4, %vm107_vm4  ;;  %v124_v55 = vunpack.c.0.s8 %v116_v52 }
  0x21   :  { %vm109_vm6 = vmpackc.low %vm94_vm2, %vm94_vm2  ;;  %v117_v56 = vsel %vm108_vm5, 16843009, %v164_v40 }
  0x22   :  { %133 = vst [vmem:[%s382_s5] sm:$0xff] %v129_v53  ;;  %vm110_vm7 = vmpackc.even %vm109_vm6, %vm109_vm6  ;;  %v125_v57 = vunpack.c.0.s8 %v117_v56  ;;  %v130_v60 = vpack.c.b16 %v124_v55, %v123_v54 }
  0x23   :  { %v118_v58 = vsel %vm110_vm7, 16843009, %v164_v40 }
  0x24   :  { %v126_v59 = vunpack.c.0.s8 %v118_v58 }
  0x26   :  { %v131_v61 = vpack.c.b16 %v126_v59, %v125_v57 }
  0x28   :  { %v132_v62 = vpack.c.b8 %v131_v61, %v130_v60 }
  0x2a   :  { %134 = vst [vmem:[%s382_s5 + $0x8] sm:$0xff] %v132_v62 }

</bundles_post_ra>
